<compile_context>
chip_gen: v6e
topology: v6e:2x2x1
jax: 0.10.0
libtpu: 0.0.40
codegen_flags: <defaults>
</compile_context>

<pallas_src>
import math

import jax
import jax.numpy as jnp
from jax.experimental import pallas as pl
from jax.experimental.pallas import tpu as pltpu


_LANE = 128      # vreg lane width
_SUBLANE = 8     # vreg sublane count
# Byte budget for one (input + output) block.  Double-buffered by the Pallas
# pipeline this stays ~4-5 MiB total: comfortably inside the scoped-VMEM
# defaults on every generation (16 MiB v5e, 32 MiB v6e, 32-of-64 MiB v7x).
_BLOCK_BYTE_BUDGET = 2 * 1024 * 1024


def _round_up(a, b):
    return -(-a // b) * b


def _center_indices(size, n_cells):
    # Matches the PyTorch module exactly: range(grid_len // 2, size, grid_len).
    # When `size % n_cells != 0` this may yield more than n_cells indices; the
    # exact PyTorch semantics are kept intentionally.
    grid_len = size // n_cells
    if grid_len <= 0:
        raise ValueError(
            f"lstms_shape ({n_cells}) must not exceed the spatial size ({size})")
    return grid_len, tuple(range(grid_len // 2, size, grid_len))


def select_center(x, input_size, lstms_shape):
    """Pallas implementation of SelectCenter.forward.

    x: array of shape (..., H, W) with (H, W) == input_size[-2:]
    returns: array of shape (..., out_h, out_w)
    """
    lstms_shape = ((lstms_shape, lstms_shape) if isinstance(lstms_shape, int)
                   else tuple(lstms_shape))
    H, W = int(input_size[-2]), int(input_size[-1])
    assert x.shape[-2] == H and x.shape[-1] == W, (x.shape, input_size)

    gh, idx_x = _center_indices(H, lstms_shape[0])
    gw, idx_y = _center_indices(W, lstms_shape[1])
    out_h, out_w = len(idx_x), len(idx_y)
    hw, ohw = H * W, out_h * out_w
    # Flattened (H*W) indices of the selected centers, row-major over (out_h, out_w).
    flat_idx = tuple(r * W + c for r in idx_x for c in idx_y)

    lead = x.shape[:-2]
    n = math.prod(lead) if lead else 1

    # Lane-dense 2-D layout (review feedback).
    xf = x.reshape(n, hw)

    esize = jnp.dtype(x.dtype).itemsize
    in_row_b = _round_up(hw, _LANE) * esize      # lane-padded bytes per row
    out_row_b = _round_up(ohw, _LANE) * esize

    # tile_nc from the padded byte budget, multiple of 8 (sublane) when tiled.
    rows_budget = _BLOCK_BYTE_BUDGET // max(in_row_b + out_row_b, 1)
    rows_budget = max(_SUBLANE, (rows_budget // _SUBLANE) * _SUBLANE)
    tile_nc = n if n <= rows_budget else rows_budget
    nc_tiles = pl.cdiv(n, tile_nc)
    # v7x megacore: ensure the parallel axis has >= 2 steps when splittable.
    if nc_tiles == 1 and n >= 2 * _SUBLANE:
        tile_nc = _round_up(-(-n // 2), _SUBLANE)
        nc_tiles = pl.cdiv(n, tile_nc)
    # If n % tile_nc != 0 the last block is clamped by Pallas so it overlaps
    # the previous one; the kernel is a pure per-row gather, so this is safe
    # (same rows are simply recomputed/rewritten).

    is_float = jnp.issubdtype(x.dtype, jnp.floating)
    cost = pl.CostEstimate(
        flops=2 * n * hw * ohw if is_float else 0,
        transcendentals=0,
        bytes_accessed=n * (hw + ohw) * esize + hw * ohw * esize,
    )
    compiler_params = pltpu.CompilerParams(dimension_semantics=("parallel",))
    out_shape = jax.ShapeDtypeStruct((n, ohw), x.dtype)
    x_spec = pl.BlockSpec((tile_nc, hw), lambda i: (i, 0))
    o_spec = pl.BlockSpec((tile_nc, ohw), lambda i: (i, 0))

    if is_float:
        # Lane gather as a one-hot matmul: one MXU op per block, one dense
        # output store, no per-column concat / vreg pressure.  Multiplying by
        # exactly representable 0/1 keeps the result bit-exact.
        sel = (jnp.arange(hw, dtype=jnp.int32)[:, None]
               == jnp.asarray(flat_idx, dtype=jnp.int32)[None, :]).astype(x.dtype)

        def kernel(x_ref, s_ref, o_ref):
            o_ref[...] = jnp.dot(
                x_ref[...], s_ref[...],
                preferred_element_type=jnp.float32).astype(o_ref.dtype)

        out = pl.pallas_call(
            kernel,
            out_shape=out_shape,
            grid=(nc_tiles,),
            in_specs=[x_spec, pl.BlockSpec((hw, ohw), lambda i: (0, 0))],
            out_specs=o_spec,
            compiler_params=compiler_params,
            cost_estimate=cost,
        )(xf, sel)
    else:
        # Non-float dtypes: static unit-lane ref-to-ref copies (no int MXU on v7x).
        def kernel(x_ref, o_ref):
            for m, f in enumerate(flat_idx):
                o_ref[:, m:m + 1] = x_ref[:, f:f + 1]

        out = pl.pallas_call(
            kernel,
            out_shape=out_shape,
            grid=(nc_tiles,),
            in_specs=[x_spec],
            out_specs=o_spec,
            compiler_params=compiler_params,
            cost_estimate=cost,
        )(xf)

    # TODO(synk): when W * itemsize >= ~512 B, a row-strided BlockSpec fetch
    # (DMA only the out_h center rows) saves gh x HBM reads; at small W the
    # contiguous-plane read used here is faster (tiny strided segments run far
    # below HBM peak), so the strided variant is intentionally not emitted.
    return out.reshape(lead + (out_h, out_w))


def _reference(x, input_size, lstms_shape):
    lstms_shape = ((lstms_shape, lstms_shape) if isinstance(lstms_shape, int)
                   else tuple(lstms_shape))
    _, idx_x = _center_indices(input_size[-2], lstms_shape[0])
    _, idx_y = _center_indices(input_size[-1], lstms_shape[1])
    out = jnp.take(x, jnp.array(idx_x, dtype=jnp.int32), axis=-2)
    out = jnp.take(out, jnp.array(idx_y, dtype=jnp.int32), axis=-1)
    return out


if __name__ == "__main__":
    key = jax.random.PRNGKey(0)
    B, C, H, W = 2, 4, 16, 16
    input_size = (H, W)
    lstms_shape = (4, 4)

    x = jax.random.normal(key, (B, C, H, W), dtype=jnp.float32)

    out = jax.block_until_ready(select_center(x, input_size, lstms_shape))

    ref = _reference(x, input_size, lstms_shape)
    assert out.shape == (B, C, lstms_shape[0], lstms_shape[1]), out.shape
    assert jnp.allclose(out, ref), "mismatch vs. reference index_select"

    print("KERNEL_OK")
</pallas_src>

<mosaic_0001>
module attributes {stable_mosaic.version = 11 : i64} {
  func.func @kernel(%arg0: i32, %arg1: memref<8x256xf32, #tpu.memory_space<vmem>>, %arg2: memref<256x16xf32, #tpu.memory_space<vmem>>, %arg3: memref<8x16xf32, #tpu.memory_space<vmem>>) attributes {dimension_semantics = [#tpu.dimension_semantics<parallel>], iteration_bounds = array<i64: 1>, scalar_prefetch = 0 : i64, scratch_operands = 0 : i64, tpu.core_type = #tpu.core_type<tc>, window_params = [{transform_indices = @transform_0, window_bounds = array<i64: 8, 256>}, {pipeline_mode = #tpu.pipeline_mode<synchronous>, transform_indices = @transform_1, window_bounds = array<i64: 256, 16>}, {transform_indices = @transform_2, window_bounds = array<i64: 8, 16>}]} {
    %c0 = arith.constant 0 : index
    %c0_0 = arith.constant 0 : index
    %0 = vector.load %arg1[%c0, %c0_0] : memref<8x256xf32, #tpu.memory_space<vmem>>, vector<8x256xf32>
    %c0_1 = arith.constant 0 : index
    %c0_2 = arith.constant 0 : index
    %1 = vector.load %arg2[%c0_1, %c0_2] : memref<256x16xf32, #tpu.memory_space<vmem>>, vector<256x16xf32>
    %cst = arith.constant dense<0.000000e+00> : vector<8x16xf32>
    %2 = tpu.matmul %0, %1, %cst {dimension_numbers = #tpu.dot_dimension_numbers<[1], [0], [0], [1], [0, 0, 1, 1], [], []>} : vector<8x256xf32>, vector<256x16xf32>, vector<8x16xf32> -> vector<8x16xf32>
    %c0_3 = arith.constant 0 : index
    %c0_4 = arith.constant 0 : index
    %3 = vector.load %arg3[%c0_3, %c0_4] : memref<8x16xf32, #tpu.memory_space<vmem>>, vector<8x16xf32>
    tpu.vector_store %arg3[%c0_3, %c0_4], %2 {strides = array<i32>} : memref<8x16xf32, #tpu.memory_space<vmem>>, vector<8x16xf32>,
    return
  }
  func.func @transform_0(%arg0: i32) -> (i32, i32) {
    %c0_i32 = arith.constant 0 : i32
    %c0_i32_0 = arith.constant 0 : i32
    return %arg0, %c0_i32 : i32, i32
  }
  func.func @transform_1(%arg0: i32) -> (i32, i32) {
    %c0_i32 = arith.constant 0 : i32
    %c0_i32_0 = arith.constant 0 : i32
    %c0_i32_1 = arith.constant 0 : i32
    return %c0_i32, %c0_i32_0 : i32, i32
  }
  func.func @transform_2(%arg0: i32) -> (i32, i32) {
    %c0_i32 = arith.constant 0 : i32
    %c0_i32_0 = arith.constant 0 : i32
    return %arg0, %c0_i32 : i32, i32
  }
}

</mosaic_0001>

<bundles_post_ra>
// kernel: tpu_custom_call.1
= control target key start
LH: loop header
LB: loop body
LE: loop exit
PB: predicated region body
PF: predicated region fallthrough
CT: control target
= control target key end

     0   :  { %s311_s0 = inlined_call_operand.vmem [shape: f32[8,256], index: 0, kind: input, shape index: {}]   ;;  %s312_s1 = inlined_call_operand.vmem [shape: f32[256,16], index: 1, kind: input, shape index: {}]   ;;  %s313_s2 = inlined_call_operand.hbm [shape: f32[8,16], index: 2, kind: output, shape index: {}]  }
   0x1   :  { %v45_v0 = vld [vmem:[%s312_s1 + $0xf8] sm:$0xff]  ;;  %v44_v2 = vld [vmem:[%s312_s1 + $0xf0] sm:$0xff]  ;;  %v43_v4 = vld [vmem:[%s312_s1 + $0xe8] sm:$0xff] }
   0x2   :  { %v29_v1 = vld [vmem:[%s312_s1 + $0x78] sm:$0xff]  ;;  %132 = vmatprep.subr.mxu0 %v45_v0  ;;  %v28_v3 = vld [vmem:[%s312_s1 + $0x70] sm:$0xff]  ;;  %v27_v5 = vld [vmem:[%s312_s1 + $0x68] sm:$0xff] }
   0x3   :  { %133 = vmatpush3.msra.mxu0 %v29_v1  ;;  %v42_v6 = vld [vmem:[%s312_s1 + $0xe0] sm:$0xff]  ;;  %v41_v8 = vld [vmem:[%s312_s1 + $0xd8] sm:$0xff]  ;;  %v40_v10 = vld [vmem:[%s312_s1 + $0xd0] sm:$0xff] }
   0x4   :  { %134 = vmatprep.subr.mxu0 %v44_v2  ;;  %v26_v7 = vld [vmem:[%s312_s1 + $0x60] sm:$0xff]  ;;  %v25_v9 = vld [vmem:[%s312_s1 + $0x58] sm:$0xff]  ;;  %v24_v11 = vld [vmem:[%s312_s1 + $0x50] sm:$0xff] }
   0x5   :  { %135 = vmatpush3.msra.mxu0 %v28_v3  ;;  %v39_v12 = vld [vmem:[%s312_s1 + $0xc8] sm:$0xff] }
   0x6   :  { %136 = vmatprep.subr.mxu0 %v43_v4  ;;  %v13_v13 = vld [vmem:[%s311_s0 + $0x8] sm:$0xff] }
   0x7   :  { %137 = vmatpush3.msra.mxu0 %v27_v5  ;;  %v23_v14 = vld [vmem:[%s312_s1 + $0x48] sm:$0xff]  ;;  %110 = vmatprep.mubr.f32.mxu0 %v13_v13 }
   0x8   :  { %138 = vmatprep.subr.mxu0 %v42_v6 }
   0x9   :  { %139 = vmatpush3.msra.mxu0 %v26_v7 }
   0xa   :  { %140 = vmatprep.subr.mxu0 %v41_v8 }
   0xb   :  { %141 = vmatpush3.msra.mxu0 %v25_v9 }
   0xc   :  { %142 = vmatprep.subr.mxu0 %v40_v10 }
   0xd   :  { %7 = vsyncpa [#allocation3], 0  ;;  %143 = vmatpush3.msra.mxu0 %v24_v11  ;;  %v38_v15 = vld [vmem:[%s312_s1 + $0xc0] sm:$0xff]  ;;  %v37_v17 = vld [vmem:[%s312_s1 + $0xb8] sm:$0xff]  ;;  %s190_s21 = smov [#allocation2]   ;;  %vm116_vm0 = vcmask 130048  }
   0xe   :  { %144 = vmatprep.subr.mxu0 %v39_v12  ;;  %v22_v16 = vld [vmem:[%s312_s1 + $0x40] sm:$0xff]  ;;  %v21_v18 = vld [vmem:[%s312_s1 + $0x38] sm:$0xff]  ;;  %v36_v19 = vld [vmem:[%s312_s1 + $0xb0] sm:$0xff]  ;;  %s124_s22 = sshll.u32 %s190_s21, 4  ;;  %s125_s22 = int_to_ptr.vmem [resolvable:$true] %s124_s22 }
   0xf   :  { %145 = vmatpush3.msra.mxu0 %v23_v14  ;;  %v20_v20 = vld [vmem:[%s312_s1 + $0x30] sm:$0xff]  ;;  %v35_v21 = vld [vmem:[%s312_s1 + $0xa8] sm:$0xff]  ;;  %v34_v23 = vld [vmem:[%s312_s1 + $0xa0] sm:$0xff]  ;;  %s168_s23 = scalar_lea.vmem %s125_s22, 128  ;;  %p173_p1 = scmp.lt.s32.totalorder %s125_s22, %s125_s22 }
  0x10   :  { %146 = vmatprep.subr.mxu0 %v38_v15  ;;  %v19_v22 = vld [vmem:[%s312_s1 + $0x28] sm:$0xff]  ;;  %v18_v24 = vld [vmem:[%s312_s1 + $0x20] sm:$0xff]  ;;  %v33_v25 = vld [vmem:[%s312_s1 + $0x98] sm:$0xff]  ;;  %p169_p0 = scmp.ne.s32.totalorder %s125_s22, %s168_s23  ;;  %p174_p2 = scmp.lt.s32.totalorder %s168_s23, %s168_s23 }
  0x11   :  { %147 = vmatpush3.msra.mxu0 %v22_v16  ;;  %v17_v26 = vld [vmem:[%s312_s1 + $0x18] sm:$0xff]  ;;  %v32_v27 = vld [vmem:[%s312_s1 + $0x90] sm:$0xff]  ;;  %v31_v29 = vld [vmem:[%s312_s1 + $0x88] sm:$0xff] }
  0x12   :  { %148 = vmatprep.subr.mxu0 %v37_v17  ;;  %v16_v28 = vld [vmem:[%s312_s1 + $0x10] sm:$0xff]  ;;  %v15_v30 = vld [vmem:[%s312_s1 + $0x8] sm:$0xff]  ;;  %v30_v31 = vld [vmem:[%s312_s1 + $0x80] sm:$0xff]  ;;  %p175_p3 = por %p174_p2, %p173_p1 }
  0x13   :  { %149 = vmatpush3.msra.mxu0 %v21_v18  ;;  %v14_v32 = vld [vmem:[%s312_s1] sm:$0xff] }
  0x14   :  { %150 = vmatprep.subr.mxu0 %v36_v19  ;;  %v12_v33 = vld [vmem:[%s311_s0] sm:$0xff]  ;;  %p176_p4 = pnand %p175_p3, %p169_p0 }
  0x15   :  { %151 = vmatpush3.msra.mxu0 %v20_v20 }
  0x16   :  { %152 = vmatprep.subr.mxu0 %v35_v21 }
  0x17   :  { %153 = vmatpush3.msra.mxu0 %v19_v22 }
  0x18   :  { %154 = vmatprep.subr.mxu0 %v34_v23 }
  0x19   :  { %155 = vmatpush3.msra.mxu0 %v18_v24 }
  0x1a   :  { %156 = vmatprep.subr.mxu0 %v33_v25 }
  0x1b   :  { %157 = vmatpush3.msra.mxu0 %v17_v26 }
  0x1c   :  { %158 = vmatprep.subr.mxu0 %v32_v27 }
  0x1d   :  { %159 = vmatpush3.msra.mxu0 %v16_v28 }
  0x1e   :  { %160 = vmatprep.subr.mxu0 %v31_v29 }
  0x1f   :  { %161 = vmatpush3.msra.mxu0 %v15_v30 }
  0x20   :  { %162 = vmatprep.subr.mxu0 %v30_v31 }
  0x21   :  { %163 = vmatpush3.msra.mxu0 %v14_v32 }
  0x22   :  { %111 = vmatmul.mubr.f32.vlgmr.msra.gmra.mxu0 %v12_v33 }
  0xe2   :  { %v164_v34 = vpop.f32.mrf.mxu0 }
  0xe4   :  { %v165_v35 = vpop.f32.mrf.mxu0 }
  0xe5   :  { %v166_v36 = vadd.f32 %v165_v35, %v164_v34 }
  0xe7   :  { %117 = vst.msk [vmem:[#allocation2] sm:$0xff] %vm116_vm0, %v166_v36 }
  0xe8   :  { %179 = shalt.err (!%p176_p4)
}
  0xe9   :  { %127 = dma.vmem_to_hbm [thread:$0]  %s125_s22, 128, %s313_s2, [#allocation3]  }
  0xea   :  { %188 = dma.done.wait [#allocation3], 128  }
  0xeb   :  { %189 = vsyncadd [#allocation3], 4294967168 }
  0xec   :  { %131 = vsyncpa [#allocation3], 1 }

</bundles_post_ra>
